<compile_context>
chip_gen: v6e
topology: v6e:2x2x1
jax: 0.10.0
libtpu: 0.0.40
codegen_flags: <defaults>
</compile_context>

<pallas_src>
import functools

import jax
import jax.numpy as jnp
import numpy as np
from jax.experimental import pallas as pl
from jax.experimental.pallas import tpu as pltpu


def gsvmc_kernel(x_ref, grad_ref, lap_ref, logp_ref, eye_ref,
                 eloc_ref, stats_ref,
                 acc_e, acc_e2, acc_pe, acc_p, *, batch):
    i = pl.program_id(0)

    @pl.when(i == 0)
    def _init():
        acc_e[...] = jnp.zeros_like(acc_e)
        acc_e2[...] = jnp.zeros_like(acc_e2)
        acc_pe[...] = jnp.zeros_like(acc_pe)
        acc_p[...] = jnp.zeros_like(acc_p)

    # ---- kinetic: -1/4 lap - 1/8 |grad logp|^2 ---------------------- (1, TB)
    g = grad_ref[...]                                           # (N*D, TB)
    kinetic = -0.25 * lap_ref[...] - 0.125 * jnp.sum(g * g, axis=0, keepdims=True)

    # ---- Coulomb pair potential sum_{i<j} 1/r_ij -------------------- (1, TB)
    D, N, TB = x_ref.shape
    r2 = None
    for d in range(D):                                          # static unroll
        xd = x_ref[d]                                           # (N, TB)
        diff = xd[:, None, :] - xd[None, :, :]                  # (N, N, TB) sublane bcast
        sq = diff * diff
        r2 = sq if r2 is None else r2 + sq

    eye = eye_ref[...]                                          # (N, N, 1): 1 on diag
    # +1 on the diagonal so rsqrt never sees 0, then mask the diagonal away.
    # (Two distinct particles at exactly identical coordinates still give inf,
    #  which is physical for a Coulomb potential.)
    inv_r = jax.lax.rsqrt(r2 + eye) * (1.0 - eye)               # EUP rsqrt + one mul
    potential = 0.5 * jnp.sum(jnp.sum(inv_r, axis=0), axis=0, keepdims=True)

    eloc = kinetic + potential                                  # (1, TB)
    eloc_ref[...] = eloc                                        # lane-dense store

    # ---- streaming accumulators for the scalar statistics -----------
    lp = logp_ref[...]                                          # (1, TB)
    acc_e[...] += eloc
    acc_e2[...] += eloc * eloc
    acc_pe[...] += lp * eloc
    acc_p[...] += lp

    # ---- finalize on the last batch tile -----------------------------
    @pl.when(i == pl.num_programs(0) - 1)
    def _finalize():
        se = jnp.sum(acc_e[...], axis=1, keepdims=True)         # (1, 1)
        se2 = jnp.sum(acc_e2[...], axis=1, keepdims=True)
        spe = jnp.sum(acc_pe[...], axis=1, keepdims=True)
        sp = jnp.sum(acc_p[...], axis=1, keepdims=True)

        inv_b = 1.0 / batch
        denom = (batch - 1.0) if batch > 1.0 else 1.0           # guard batch == 1
        E = se * inv_b
        var = (se2 - batch * E * E) / denom
        E_std = jnp.sqrt(jnp.maximum(var, 0.0))
        gradE = (spe - E * sp) * inv_b                          # mean(logp*(Eloc-E))

        lane = jax.lax.broadcasted_iota(jnp.int32, (1, 8), 1)
        stats_ref[...] = (jnp.where(lane == 0, E, 0.0)
                          + jnp.where(lane == 1, E_std, 0.0)
                          + jnp.where(lane == 2, gradE, 0.0))


def gsvmc_forward(x, grad_logp, laplacian_logp, logp_full, *, tb=None):
    """Fused GSVMC.forward.  Returns (gradE, Eloc, E, E_std)."""
    B, N, D = x.shape
    if tb is None:
        tb = 128 if B % 128 == 0 else B
    assert B % tb == 0, "batch must be divisible by the batch tile"

    x_t = jnp.transpose(x, (2, 1, 0)).astype(jnp.float32)           # (D, N, B)
    grad_t = grad_logp.reshape(B, N * D).T.astype(jnp.float32)      # (N*D, B)
    lap = laplacian_logp.reshape(1, B).astype(jnp.float32)
    logp = logp_full.reshape(1, B).astype(jnp.float32)
    eye = jnp.asarray(np.eye(N, dtype=np.float32)[:, :, None])      # (N, N, 1)

    kernel = functools.partial(gsvmc_kernel, batch=float(B))
    eloc, stats = pl.pallas_call(
        kernel,
        out_shape=(jax.ShapeDtypeStruct((1, B), jnp.float32),        # Eloc, lane-dense
                   jax.ShapeDtypeStruct((1, 8), jnp.float32)),       # packed scalars
        grid_spec=pltpu.PrefetchScalarGridSpec(
            num_scalar_prefetch=0,
            grid=(B // tb,),
            in_specs=[
                pl.BlockSpec((D, N, tb), lambda i: (0, 0, i)),
                pl.BlockSpec((N * D, tb), lambda i: (0, i)),
                pl.BlockSpec((1, tb), lambda i: (0, i)),
                pl.BlockSpec((1, tb), lambda i: (0, i)),
                pl.BlockSpec((N, N, 1), lambda i: (0, 0, 0)),
            ],
            out_specs=(
                pl.BlockSpec((1, tb), lambda i: (0, i)),
                pl.BlockSpec((1, 8), lambda i: (0, 0)),               # resident accumulator
            ),
            scratch_shapes=[pltpu.VMEM((1, tb), jnp.float32)] * 4,
        ),
        compiler_params=pltpu.CompilerParams(
            # stats reduce across batch tiles -> reduction axis must be arbitrary
            dimension_semantics=("arbitrary",),
            vmem_limit_bytes=32 * 1024 * 1024,
        ),
    )(x_t, grad_t, lap, logp, eye)

    E = stats[0, 0]
    E_std = stats[0, 1]
    gradE = stats[0, 2]
    return gradE, eloc.reshape(B), E, E_std


if __name__ == "__main__":
    key = jax.random.PRNGKey(0)
    B, N, D = 256, 4, 2     # batch, particles (nup=2, ndown=2), 2D trap
    k1, k2, k3, k4 = jax.random.split(key, 4)
    x = jax.random.normal(k1, (B, N, D), jnp.float32)
    grad_logp = jax.random.normal(k2, (B, N, D), jnp.float32)
    laplacian_logp = jax.random.normal(k3, (B,), jnp.float32)
    logp_full = jax.random.normal(k4, (B,), jnp.float32)

    # tb=128 -> grid of 2 batch tiles, exercising the cross-tile accumulation.
    gradE, eloc, E, E_std = gsvmc_forward(
        x, grad_logp, laplacian_logp, logp_full, tb=128)
    jax.block_until_ready((gradE, eloc, E, E_std))

    # ---- pure-JAX reference (same math) ----
    kin = -0.25 * laplacian_logp - 0.125 * jnp.sum(grad_logp ** 2, axis=(1, 2))
    diff = x[:, :, None, :] - x[:, None, :, :]
    r2 = jnp.sum(diff ** 2, axis=-1)
    eyeb = jnp.eye(N, dtype=bool)
    inv_r = jnp.where(eyeb, 0.0, 1.0 / jnp.sqrt(jnp.where(eyeb, 1.0, r2)))
    pot = 0.5 * jnp.sum(inv_r, axis=(1, 2))
    eloc_r = kin + pot
    E_r = eloc_r.mean()
    E_std_r = jnp.std(eloc_r, ddof=1)
    gradE_r = (logp_full * (eloc_r - E_r)).mean()

    np.testing.assert_allclose(np.asarray(eloc), np.asarray(eloc_r),
                               rtol=1e-4, atol=1e-4)
    np.testing.assert_allclose(float(E), float(E_r), rtol=1e-4, atol=1e-4)
    np.testing.assert_allclose(float(E_std), float(E_std_r), rtol=1e-3, atol=1e-4)
    np.testing.assert_allclose(float(gradE), float(gradE_r), rtol=1e-3, atol=1e-4)

    print("KERNEL_OK")
</pallas_src>

<mosaic_0001>
module attributes {stable_mosaic.version = 11 : i64} {
  func.func @gsvmc_kernel(%arg0: i32, %arg1: memref<2x4x128xf32, #tpu.memory_space<vmem>>, %arg2: memref<8x128xf32, #tpu.memory_space<vmem>>, %arg3: memref<1x128xf32, #tpu.memory_space<vmem>>, %arg4: memref<1x128xf32, #tpu.memory_space<vmem>>, %arg5: memref<4x4x1xf32, #tpu.memory_space<vmem>>, %arg6: memref<1x128xf32, #tpu.memory_space<vmem>>, %arg7: memref<1x8xf32, #tpu.memory_space<vmem>>, %arg8: memref<1x128xf32, #tpu.memory_space<vmem>>, %arg9: memref<1x128xf32, #tpu.memory_space<vmem>>, %arg10: memref<1x128xf32, #tpu.memory_space<vmem>>, %arg11: memref<1x128xf32, #tpu.memory_space<vmem>>) attributes {dimension_semantics = [#tpu.dimension_semantics<arbitrary>], iteration_bounds = array<i64: 2>, scalar_prefetch = 0 : i64, scratch_operands = 4 : i64, tpu.core_type = #tpu.core_type<tc>, window_params = [{transform_indices = @transform_0, window_bounds = array<i64: 2, 4, 128>}, {transform_indices = @transform_1, window_bounds = array<i64: 8, 128>}, {transform_indices = @transform_2, window_bounds = array<i64: 1, 128>}, {transform_indices = @transform_3, window_bounds = array<i64: 1, 128>}, {pipeline_mode = #tpu.pipeline_mode<synchronous>, transform_indices = @transform_4, window_bounds = array<i64: 4, 4, 1>}, {transform_indices = @transform_5, window_bounds = array<i64: 1, 128>}, {pipeline_mode = #tpu.pipeline_mode<synchronous>, transform_indices = @transform_6, window_bounds = array<i64: 1, 8>}]} {
    %c0_i32 = arith.constant 0 : i32
    %0 = arith.cmpi eq, %arg0, %c0_i32 : i32
    %1 = arith.extui %0 : i1 to i32
    %c0_i32_0 = arith.constant 0 : i32
    %2 = arith.cmpi ne, %1, %c0_i32_0 : i32
    scf.if %2 {
      %cst_39 = arith.constant 0.000000e+00 : f32
      %63 = vector.broadcast %cst_39 : f32 to vector<1x128xf32>
      %c0_40 = arith.constant 0 : index
      %c0_41 = arith.constant 0 : index
      %64 = vector.load %arg8[%c0_40, %c0_41] : memref<1x128xf32, #tpu.memory_space<vmem>>, vector<1x128xf32>
      tpu.vector_store %arg8[%c0_40, %c0_41], %63 {strides = array<i32>} : memref<1x128xf32, #tpu.memory_space<vmem>>, vector<1x128xf32>,
      %cst_42 = arith.constant 0.000000e+00 : f32
      %65 = vector.broadcast %cst_42 : f32 to vector<1x128xf32>
      %c0_43 = arith.constant 0 : index
      %c0_44 = arith.constant 0 : index
      %66 = vector.load %arg9[%c0_43, %c0_44] : memref<1x128xf32, #tpu.memory_space<vmem>>, vector<1x128xf32>
      tpu.vector_store %arg9[%c0_43, %c0_44], %65 {strides = array<i32>} : memref<1x128xf32, #tpu.memory_space<vmem>>, vector<1x128xf32>,
      %cst_45 = arith.constant 0.000000e+00 : f32
      %67 = vector.broadcast %cst_45 : f32 to vector<1x128xf32>
      %c0_46 = arith.constant 0 : index
      %c0_47 = arith.constant 0 : index
      %68 = vector.load %arg10[%c0_46, %c0_47] : memref<1x128xf32, #tpu.memory_space<vmem>>, vector<1x128xf32>
      tpu.vector_store %arg10[%c0_46, %c0_47], %67 {strides = array<i32>} : memref<1x128xf32, #tpu.memory_space<vmem>>, vector<1x128xf32>,
      %cst_48 = arith.constant 0.000000e+00 : f32
      %69 = vector.broadcast %cst_48 : f32 to vector<1x128xf32>
      %c0_49 = arith.constant 0 : index
      %c0_50 = arith.constant 0 : index
      %70 = vector.load %arg11[%c0_49, %c0_50] : memref<1x128xf32, #tpu.memory_space<vmem>>, vector<1x128xf32>
      tpu.vector_store %arg11[%c0_49, %c0_50], %69 {strides = array<i32>} : memref<1x128xf32, #tpu.memory_space<vmem>>, vector<1x128xf32>,
    } else {
    }
    %c0 = arith.constant 0 : index
    %c0_1 = arith.constant 0 : index
    %3 = vector.load %arg2[%c0, %c0_1] : memref<8x128xf32, #tpu.memory_space<vmem>>, vector<8x128xf32>
    %c0_2 = arith.constant 0 : index
    %c0_3 = arith.constant 0 : index
    %4 = vector.load %arg3[%c0_2, %c0_3] : memref<1x128xf32, #tpu.memory_space<vmem>>, vector<1x128xf32>
    %cst = arith.constant -2.500000e-01 : f32
    %5 = vector.broadcast %cst : f32 to vector<1x128xf32>
    %6 = arith.mulf %5, %4 : vector<1x128xf32>
    %7 = arith.mulf %3, %3 : vector<8x128xf32>
    %cst_4 = arith.constant dense<0.000000e+00> : vector<128xf32>
    %8 = vector.multi_reduction <add>, %7, %cst_4 [0] : vector<8x128xf32> to vector<128xf32>
    %9 = vector.shape_cast %8 : vector<128xf32> to vector<1x128xf32>
    %cst_5 = arith.constant 1.250000e-01 : f32
    %10 = vector.broadcast %cst_5 : f32 to vector<1x128xf32>
    %11 = arith.mulf %10, %9 : vector<1x128xf32>
    %12 = arith.subf %6, %11 : vector<1x128xf32>
    %c0_6 = arith.constant 0 : index
    %c0_7 = arith.constant 0 : index
    %c0_8 = arith.constant 0 : index
    %13 = vector.load %arg1[%c0_6, %c0_7, %c0_8] : memref<2x4x128xf32, #tpu.memory_space<vmem>>, vector<1x4x128xf32>
    %14 = vector.shape_cast %13 : vector<1x4x128xf32> to vector<4x128xf32>
    %15 = vector.shape_cast %14 : vector<4x128xf32> to vector<4x1x128xf32>
    %16 = vector.shape_cast %14 : vector<4x128xf32> to vector<1x4x128xf32>
    %17 = vector.broadcast %15 : vector<4x1x128xf32> to vector<4x4x128xf32>
    %18 = vector.broadcast %16 : vector<1x4x128xf32> to vector<4x4x128xf32>
    %19 = arith.subf %17, %18 : vector<4x4x128xf32>
    %20 = arith.mulf %19, %19 : vector<4x4x128xf32>
    %c1 = arith.constant 1 : index
    %c0_9 = arith.constant 0 : index
    %c0_10 = arith.constant 0 : index
    %21 = vector.load %arg1[%c1, %c0_9, %c0_10] : memref<2x4x128xf32, #tpu.memory_space<vmem>>, vector<1x4x128xf32>
    %22 = vector.shape_cast %21 : vector<1x4x128xf32> to vector<4x128xf32>
    %23 = vector.shape_cast %22 : vector<4x128xf32> to vector<4x1x128xf32>
    %24 = vector.shape_cast %22 : vector<4x128xf32> to vector<1x4x128xf32>
    %25 = vector.broadcast %23 : vector<4x1x128xf32> to vector<4x4x128xf32>
    %26 = vector.broadcast %24 : vector<1x4x128xf32> to vector<4x4x128xf32>
    %27 = arith.subf %25, %26 : vector<4x4x128xf32>
    %28 = arith.mulf %27, %27 : vector<4x4x128xf32>
    %29 = arith.addf %20, %28 : vector<4x4x128xf32>
    %c0_11 = arith.constant 0 : index
    %c0_12 = arith.constant 0 : index
    %c0_13 = arith.constant 0 : index
    %30 = vector.load %arg5[%c0_11, %c0_12, %c0_13] : memref<4x4x1xf32, #tpu.memory_space<vmem>>, vector<4x4x1xf32>
    %31 = vector.broadcast %30 : vector<4x4x1xf32> to vector<4x4x128xf32>
    %32 = arith.addf %29, %31 : vector<4x4x128xf32>
    %33 = math.rsqrt %32 : vector<4x4x128xf32>
    %cst_14 = arith.constant 1.000000e+00 : f32
    %34 = vector.broadcast %cst_14 : f32 to vector<4x4x1xf32>
    %35 = arith.subf %34, %30 : vector<4x4x1xf32>
    %36 = vector.broadcast %35 : vector<4x4x1xf32> to vector<4x4x128xf32>
    %37 = arith.mulf %33, %36 : vector<4x4x128xf32>
    %cst_15 = arith.constant dense<0.000000e+00> : vector<4x128xf32>
    %38 = vector.multi_reduction <add>, %37, %cst_15 [0] : vector<4x4x128xf32> to vector<4x128xf32>
    %cst_16 = arith.constant dense<0.000000e+00> : vector<128xf32>
    %39 = vector.multi_reduction <add>, %38, %cst_16 [0] : vector<4x128xf32> to vector<128xf32>
    %40 = vector.shape_cast %39 : vector<128xf32> to vector<1x128xf32>
    %cst_17 = arith.constant 5.000000e-01 : f32
    %41 = vector.broadcast %cst_17 : f32 to vector<1x128xf32>
    %42 = arith.mulf %41, %40 : vector<1x128xf32>
    %43 = arith.addf %12, %42 : vector<1x128xf32>
    %c0_18 = arith.constant 0 : index
    %c0_19 = arith.constant 0 : index
    %44 = vector.load %arg6[%c0_18, %c0_19] : memref<1x128xf32, #tpu.memory_space<vmem>>, vector<1x128xf32>
    tpu.vector_store %arg6[%c0_18, %c0_19], %43 {strides = array<i32>} : memref<1x128xf32, #tpu.memory_space<vmem>>, vector<1x128xf32>,
    %c0_20 = arith.constant 0 : index
    %c0_21 = arith.constant 0 : index
    %45 = vector.load %arg4[%c0_20, %c0_21] : memref<1x128xf32, #tpu.memory_space<vmem>>, vector<1x128xf32>
    %c0_22 = arith.constant 0 : index
    %c0_23 = arith.constant 0 : index
    %46 = vector.load %arg8[%c0_22, %c0_23] : memref<1x128xf32, #tpu.memory_space<vmem>>, vector<1x128xf32>
    %47 = arith.addf %46, %43 : vector<1x128xf32>
    %c0_24 = arith.constant 0 : index
    %c0_25 = arith.constant 0 : index
    %48 = vector.load %arg8[%c0_24, %c0_25] : memref<1x128xf32, #tpu.memory_space<vmem>>, vector<1x128xf32>
    tpu.vector_store %arg8[%c0_24, %c0_25], %47 {strides = array<i32>} : memref<1x128xf32, #tpu.memory_space<vmem>>, vector<1x128xf32>,
    %c0_26 = arith.constant 0 : index
    %c0_27 = arith.constant 0 : index
    %49 = vector.load %arg9[%c0_26, %c0_27] : memref<1x128xf32, #tpu.memory_space<vmem>>, vector<1x128xf32>
    %50 = arith.mulf %43, %43 : vector<1x128xf32>
    %51 = arith.addf %49, %50 : vector<1x128xf32>
    %c0_28 = arith.constant 0 : index
    %c0_29 = arith.constant 0 : index
    %52 = vector.load %arg9[%c0_28, %c0_29] : memref<1x128xf32, #tpu.memory_space<vmem>>, vector<1x128xf32>
    tpu.vector_store %arg9[%c0_28, %c0_29], %51 {strides = array<i32>} : memref<1x128xf32, #tpu.memory_space<vmem>>, vector<1x128xf32>,
    %c0_30 = arith.constant 0 : index
    %c0_31 = arith.constant 0 : index
    %53 = vector.load %arg10[%c0_30, %c0_31] : memref<1x128xf32, #tpu.memory_space<vmem>>, vector<1x128xf32>
    %54 = arith.mulf %45, %43 : vector<1x128xf32>
    %55 = arith.addf %53, %54 : vector<1x128xf32>
    %c0_32 = arith.constant 0 : index
    %c0_33 = arith.constant 0 : index
    %56 = vector.load %arg10[%c0_32, %c0_33] : memref<1x128xf32, #tpu.memory_space<vmem>>, vector<1x128xf32>
    tpu.vector_store %arg10[%c0_32, %c0_33], %55 {strides = array<i32>} : memref<1x128xf32, #tpu.memory_space<vmem>>, vector<1x128xf32>,
    %c0_34 = arith.constant 0 : index
    %c0_35 = arith.constant 0 : index
    %57 = vector.load %arg11[%c0_34, %c0_35] : memref<1x128xf32, #tpu.memory_space<vmem>>, vector<1x128xf32>
    %58 = arith.addf %57, %45 : vector<1x128xf32>
    %c0_36 = arith.constant 0 : index
    %c0_37 = arith.constant 0 : index
    %59 = vector.load %arg11[%c0_36, %c0_37] : memref<1x128xf32, #tpu.memory_space<vmem>>, vector<1x128xf32>
    tpu.vector_store %arg11[%c0_36, %c0_37], %58 {strides = array<i32>} : memref<1x128xf32, #tpu.memory_space<vmem>>, vector<1x128xf32>,
    %c1_i32 = arith.constant 1 : i32
    %60 = arith.cmpi eq, %arg0, %c1_i32 : i32
    %61 = arith.extui %60 : i1 to i32
    %c0_i32_38 = arith.constant 0 : i32
    %62 = arith.cmpi ne, %61, %c0_i32_38 : i32
    scf.if %62 {
      %c0_39 = arith.constant 0 : index
      %c0_40 = arith.constant 0 : index
      %63 = vector.load %arg8[%c0_39, %c0_40] : memref<1x128xf32, #tpu.memory_space<vmem>>, vector<1x128xf32>
      %cst_41 = arith.constant dense<0.000000e+00> : vector<1xf32>
      %64 = vector.multi_reduction <add>, %63, %cst_41 [1] : vector<1x128xf32> to vector<1xf32>
      %65 = vector.shape_cast %64 : vector<1xf32> to vector<1x1xf32>
      %c0_42 = arith.constant 0 : index
      %c0_43 = arith.constant 0 : index
      %66 = vector.load %arg9[%c0_42, %c0_43] : memref<1x128xf32, #tpu.memory_space<vmem>>, vector<1x128xf32>
      %cst_44 = arith.constant dense<0.000000e+00> : vector<1xf32>
      %67 = vector.multi_reduction <add>, %66, %cst_44 [1] : vector<1x128xf32> to vector<1xf32>
      %68 = vector.shape_cast %67 : vector<1xf32> to vector<1x1xf32>
      %c0_45 = arith.constant 0 : index
      %c0_46 = arith.constant 0 : index
      %69 = vector.load %arg10[%c0_45, %c0_46] : memref<1x128xf32, #tpu.memory_space<vmem>>, vector<1x128xf32>
      %cst_47 = arith.constant dense<0.000000e+00> : vector<1xf32>
      %70 = vector.multi_reduction <add>, %69, %cst_47 [1] : vector<1x128xf32> to vector<1xf32>
      %71 = vector.shape_cast %70 : vector<1xf32> to vector<1x1xf32>
      %c0_48 = arith.constant 0 : index
      %c0_49 = arith.constant 0 : index
      %72 = vector.load %arg11[%c0_48, %c0_49] : memref<1x128xf32, #tpu.memory_space<vmem>>, vector<1x128xf32>
      %cst_50 = arith.constant dense<0.000000e+00> : vector<1xf32>
      %73 = vector.multi_reduction <add>, %72, %cst_50 [1] : vector<1x128xf32> to vector<1xf32>
      %74 = vector.shape_cast %73 : vector<1xf32> to vector<1x1xf32>
      %cst_51 = arith.constant 3.906250e-03 : f32
      %75 = vector.broadcast %cst_51 : f32 to vector<1x1xf32>
      %76 = arith.mulf %65, %75 : vector<1x1xf32>
      %cst_52 = arith.constant 2.560000e+02 : f32
      %77 = vector.broadcast %cst_52 : f32 to vector<1x1xf32>
      %78 = arith.mulf %77, %76 : vector<1x1xf32>
      %79 = arith.mulf %78, %76 : vector<1x1xf32>
      %80 = arith.subf %68, %79 : vector<1x1xf32>
      %cst_53 = arith.constant 2.550000e+02 : f32
      %81 = vector.broadcast %cst_53 : f32 to vector<1x1xf32>
      %82 = arith.divf %80, %81 : vector<1x1xf32>
      %cst_54 = arith.constant 0.000000e+00 : f32
      %83 = vector.broadcast %cst_54 : f32 to vector<1x1xf32>
      %84 = arith.maximumf %82, %83 : vector<1x1xf32>
      %85 = math.sqrt %84 : vector<1x1xf32>
      %86 = arith.mulf %76, %74 : vector<1x1xf32>
      %87 = arith.subf %71, %86 : vector<1x1xf32>
      %cst_55 = arith.constant 3.906250e-03 : f32
      %88 = vector.broadcast %cst_55 : f32 to vector<1x1xf32>
      %89 = arith.mulf %87, %88 : vector<1x1xf32>
      %90 = tpu.iota {dimensions = array<i32: 1>} : vector<1x8xi32>
      %c0_i32_56 = arith.constant 0 : i32
      %91 = vector.broadcast %c0_i32_56 : i32 to vector<1x8xi32>
      %92 = arith.cmpi eq, %90, %91 : vector<1x8xi32>
      %cst_57 = arith.constant 0.000000e+00 : f32
      %93 = vector.shape_cast %76 : vector<1x1xf32> to vector<1x1xf32>
      %94 = vector.broadcast %93 : vector<1x1xf32> to vector<1x8xf32>
      %95 = vector.broadcast %cst_57 : f32 to vector<1x8xf32>
      %96 = arith.select %92, %94, %95 : vector<1x8xi1>, vector<1x8xf32>
      %c1_i32_58 = arith.constant 1 : i32
      %97 = vector.broadcast %c1_i32_58 : i32 to vector<1x8xi32>
      %98 = arith.cmpi eq, %90, %97 : vector<1x8xi32>
      %cst_59 = arith.constant 0.000000e+00 : f32
      %99 = vector.shape_cast %85 : vector<1x1xf32> to vector<1x1xf32>
      %100 = vector.broadcast %99 : vector<1x1xf32> to vector<1x8xf32>
      %101 = vector.broadcast %cst_59 : f32 to vector<1x8xf32>
      %102 = arith.select %98, %100, %101 : vector<1x8xi1>, vector<1x8xf32>
      %103 = arith.addf %96, %102 : vector<1x8xf32>
      %c2_i32 = arith.constant 2 : i32
      %104 = vector.broadcast %c2_i32 : i32 to vector<1x8xi32>
      %105 = arith.cmpi eq, %90, %104 : vector<1x8xi32>
      %cst_60 = arith.constant 0.000000e+00 : f32
      %106 = vector.shape_cast %89 : vector<1x1xf32> to vector<1x1xf32>
      %107 = vector.broadcast %106 : vector<1x1xf32> to vector<1x8xf32>
      %108 = vector.broadcast %cst_60 : f32 to vector<1x8xf32>
      %109 = arith.select %105, %107, %108 : vector<1x8xi1>, vector<1x8xf32>
      %110 = arith.addf %103, %109 : vector<1x8xf32>
      %c0_61 = arith.constant 0 : index
      %c0_62 = arith.constant 0 : index
      %111 = vector.load %arg7[%c0_61, %c0_62] : memref<1x8xf32, #tpu.memory_space<vmem>>, vector<1x8xf32>
      tpu.vector_store %arg7[%c0_61, %c0_62], %110 {strides = array<i32>} : memref<1x8xf32, #tpu.memory_space<vmem>>, vector<1x8xf32>,
    } else {
    }
    return
  }
  func.func @transform_0(%arg0: i32) -> (i32, i32, i32) {
    %c0_i32 = arith.constant 0 : i32
    %c0_i32_0 = arith.constant 0 : i32
    %c0_i32_1 = arith.constant 0 : i32
    return %c0_i32, %c0_i32_0, %arg0 : i32, i32, i32
  }
  func.func @transform_1(%arg0: i32) -> (i32, i32) {
    %c0_i32 = arith.constant 0 : i32
    %c0_i32_0 = arith.constant 0 : i32
    return %c0_i32, %arg0 : i32, i32
  }
  func.func @transform_2(%arg0: i32) -> (i32, i32) {
    %c0_i32 = arith.constant 0 : i32
    %c0_i32_0 = arith.constant 0 : i32
    return %c0_i32, %arg0 : i32, i32
  }
  func.func @transform_3(%arg0: i32) -> (i32, i32) {
    %c0_i32 = arith.constant 0 : i32
    %c0_i32_0 = arith.constant 0 : i32
    return %c0_i32, %arg0 : i32, i32
  }
  func.func @transform_4(%arg0: i32) -> (i32, i32, i32) {
    %c0_i32 = arith.constant 0 : i32
    %c0_i32_0 = arith.constant 0 : i32
    %c0_i32_1 = arith.constant 0 : i32
    %c0_i32_2 = arith.constant 0 : i32
    return %c0_i32, %c0_i32_0, %c0_i32_1 : i32, i32, i32
  }
  func.func @transform_5(%arg0: i32) -> (i32, i32) {
    %c0_i32 = arith.constant 0 : i32
    %c0_i32_0 = arith.constant 0 : i32
    return %c0_i32, %arg0 : i32, i32
  }
  func.func @transform_6(%arg0: i32) -> (i32, i32) {
    %c0_i32 = arith.constant 0 : i32
    %c0_i32_0 = arith.constant 0 : i32
    %c0_i32_1 = arith.constant 0 : i32
    return %c0_i32, %c0_i32_0 : i32, i32
  }
}

</mosaic_0001>

<bundles_post_ra>
// kernel: tpu_custom_call.1
= control target key start
LH: loop header
LB: loop body
LE: loop exit
PB: predicated region body
PF: predicated region fallthrough
CT: control target
= control target key end

     0   :  { %s1217_s0 = inlined_call_operand.vmem [shape: f32[2,4,256], index: 0, kind: input, shape index: {}]   ;;  %s1218_s1 = inlined_call_operand.hbm [shape: f32[8,256], index: 1, kind: input, shape index: {}]   ;;  %s1219_s2 = inlined_call_operand.vmem [shape: f32[1,256], index: 2, kind: input, shape index: {}]   ;;  %s1220_s3 = inlined_call_operand.vmem [shape: f32[1,256], index: 3, kind: input, shape index: {}]   ;;  %s1221_s4 = inlined_call_operand.vmem [shape: f32[4,4,1], index: 4, kind: input, shape index: {}]   ;;  %s1222_s5 = inlined_call_operand.hbm [shape: f32[1,256], index: 5, kind: output, shape index: {0}]   ;;  %s1223_s6 = inlined_call_operand.hbm [shape: f32[1,8], index: 6, kind: output, shape index: {1}]  }
   0x1   :  { %1227 = sst [smem:[#allocation16_spill]] %s1217_s0 }
   0x2   :  { %12 = vsyncpa [#allocation8], 0 }
   0x3   :  { %14 = vsyncpa [#allocation8 + $0x1], 0 }
   0x4   :  { %15 = vsyncpa [#allocation9], 0 }
   0x5   :  { %17 = vsyncpa [#allocation9 + $0x1], 0 }
   0x6   :  { %18 = vsyncpa [#allocation12], 0  ;;  %s1015_s21 = smov 0   ;;  %s1017_s22 = smov 0  }
   0x7   :  { %s1019_s23 = smov 0   ;;  %s1021_s24 = smov 0  }
   0x8 LB: > { %s1036_s25 = sadd.s32 4294967295, %s972_s24   ;;  %s773_s26 = sadd.s32 4294967294, %s972_s24   ;;  %s972_s24 = sphi %s1021_s24, %s1243_s24   ;;  %s968_s23 = sphi %s1019_s23, %s1242_s23   ;;  %s964_s22 = sphi %s1017_s22, %s1241_s22   ;;  %s960_s21 = sphi %s1015_s21, %s1240_s21  }
   0x9   : > { %s1040_s27 = sadd.s32 1, %s972_s24   ;;  %s31_s28 = sadd.s32 1, %s968_s23 }
   0xa   : > { %s28_s29 = ssub.s32 %s972_s24, %s1040_s27  ;;  %p38_p0 = scmp.ne.s32.totalorder %s968_s23, %s964_s22 }
   0xb   : > { %p29_p1 = scmp.eq.s32.totalorder %s28_s29, 0  ;;  %p39_p2 = scmp.eq.s32.totalorder %s972_s24, 0 }
   0xc   : > { %p70_p3 = scmp.ne.s32.totalorder %s964_s22, %s960_s21  ;;  %p71_p4 = scmp.eq.s32.totalorder %s1036_s25, 0 }
   0xd   : > { %s1052_s30 = scalar_select %p29_p1, %s968_s23, %s31_s28  }
   0xe   : > { %p1054_p5 = por %p39_p2, %p38_p0  ;;  %p1058_p6 = por %p71_p4, %p70_p3 }
   0xf   : > { %p1225_p7 = scmp.eq.s32.totalorder %s1036_s25, 1  ;;  %p173_p8 = scmp.eq.s32.totalorder %s773_s26, 1 }
  0x10   : > { %p1224_p11 = scmp.ge.s32.totalorder %s972_s24, 2 }
  0x11   : > { %p1065_p9 = por %p1225_p7, %p38_p0  ;;  %p1069_p10 = por %p173_p8, %p70_p3 }
  0x12   : > { %213 = sbr.rel (%p1224_p11) target bundleno = 58 (0x3a), region = 20 }
  0x13   : > { %s1230_s9 = scalar_select %p1065_p9, 1, 0 }
  0x14   : > { %s1231_s10 = scalar_select %p1069_p10, 1, 0 }
  0x17   : > { %216 = sbr.rel (!%p1054_p5) target bundleno = 34 (0x22), region = 24  ;;  %s218_s11 = sand.u32 (%p1054_p5), 1, %s968_s23  }
  0x18   : > { %s777_s12 = sshll.u32 (%p1054_p5), %s972_s24, 2  ;;  %s776_s13 = sshll.u32 (%p1054_p5), %s218_s11, 3 }
  0x19   : > { %s1232_s0 = sld [smem:[#allocation16_spill]] (%p1054_p5)  ;;  %s220_s17 = scalar_lea.vmem (%p1054_p5), [#allocation6], %s776_s13 }
  0x1f   : > { %s222_s16 = scalar_lea.vmem %s1232_s0, %s777_s12 }
  0x20   : > { %v239_v0 = vld [vmem:[%s222_s16] sm:$0xf]  ;;  %v241_v1 = vld [vmem:[%s222_s16 + $0x8] sm:$0xf] }
  0x21   : > { %240 = vst [vmem:[%s220_s17] sm:$0xf] %v239_v0  ;;  %242 = vst [vmem:[%s220_s17 + $0x4] sm:$0xf] %v241_v1 }
  0x22 PF: > { %s271_s18 = sand.u32 1, %s968_s23   ;;  %s779_s19 = sshll.u32 %s972_s24, 7 }
  0x23   : > { %s778_s20 = sshll.u32 %s271_s18, 3  ;;  %s1088_s29 = scalar_lea.hbm %s1218_s1, %s779_s19 }
  0x24   : > { %s275_s11 = scalar_lea.vmem [#allocation7], %s778_s20  ;;  %s272_s13 = scalar_lea.sflag [#allocation8], %s271_s18 }
  0x25   : > { %s282_s12 = sshll.u32 %s275_s11, 4  ;;  %s854_s14 = scalar_lea.hbm %s1088_s29, 128  ;;  %s283_s12 = int_to_ptr.vmem [resolvable:$true] %s282_s12 }
  0x26   : > { %p855_p12 = scmp.ne.s32.totalorder %s1088_s29, %s854_s14  ;;  %s858_s17 = scalar_lea.hbm %s1218_s1, 256 }
  0x27   : > { %p859_p1 = scmp.lt.s32.totalorder %s1088_s29, %s1218_s1  ;;  %p860_p2 = scmp.lt.s32.totalorder %s858_s17, %s854_s14 }
  0x28   : > { %p856_p13 = pnand %p855_p12, %p1054_p5 }
  0x29   : > { %p861_p3 = por %p860_p2, %p859_p1 }
  0x2a   : > { %p857_p0 = pneg %p856_p13 }
  0x2c   : > { %p862_p4 = pnand %p861_p3, %p857_p0 }
  0x2e   : > { %865 = shalt.err (!%p862_p4)
}
  0x2f   : > { %s866_s19 = scalar_lea.vmem %s283_s12, 128  ;;  %s974_s18 = smov [#allocation7]  }
  0x30   : > { %p867_p8 = scmp.ne.s32.totalorder %s283_s12, %s866_s19  ;;  %s870_s20 = sshll.u32 %s974_s18, 4  ;;  %s871_s20 = int_to_ptr.vmem [resolvable:$false] %s870_s20 }
  0x31   : > { %s872_s28 = scalar_lea.vmem %s871_s20, 256  ;;  %p873_p12 = scmp.lt.s32.totalorder %s283_s12, %s871_s20 }
  0x32   : > { %p868_p11 = pnand %p867_p8, %p1054_p5  ;;  %p874_p13 = scmp.lt.s32.totalorder %s872_s28, %s866_s19 }
  0x34   : > { %p869_p7 = pneg %p868_p11  ;;  %p875_p10 = por %p874_p13, %p873_p12 }
  0x36   : > { %p876_p9 = pnand %p875_p10, %p869_p7 }
  0x38   : > { %879 = shalt.err (!%p876_p9)
}
  0x39   : > { %791 = dma.hbm_to_vmem [thread:$0]  (%p1054_p5), %s1088_s29, 128, %s283_s12, %s272_s13  }
  0x3a PF: > { %p780_p0 = scmp.ge.s32.totalorder %s972_s24, 1  ;;  %p299_p1 = scmp.lt.s32.totalorder %s972_s24, 3 }
  0x3c   : > { %p300_p2 = pnand %p780_p0, %p299_p1 }
  0x3d   : > { %s1109_s0 = sand.u32 (!%p300_p2), 1, %s964_s22  }
  0x3e   : > { %303 = sbr.rel (%p300_p2) target bundleno = 480 (0x1e0), region = 77  ;;  %s781_s11 = sshll.u32 (!%p300_p2), %s1109_s0, 3 }
  0x3f   : > { %s1112_s14 = scalar_lea.vmem (!%p300_p2), [#allocation6], %s781_s11  ;;  %s313_s15 = scalar_lea.sflag (!%p300_p2), [#allocation8], %s1109_s0 }
  0x40   : > { %s1115_s7 = scalar_lea.vmem (!%p300_p2), [#allocation7], %s781_s11 }
  0x43   : > { %947 = dma.done.wait (%p1058_p6), %s313_s15, 128  }
  0x44   : > { %949 = vsyncadd (%p1058_p6), %s313_s15, 4294967168  ;;  %p354_p5 = scmp.lt.s32.totalorder %s1036_s25, 1  ;;  %s351_s18 = scalar_lea.vmem [#allocation10], %s1109_s0 }
  0x45   : > { %p783_p7 = scmp.ne.s32.totalorder %s1036_s25, 0 }
  0x46   : > { %s1123_s29 = scalar_select %p354_p5, %s1036_s25, 1 }
  0x47   : > { %363 = sbr.rel (%p783_p7) target bundleno = 79 (0x4f), region = 89 }
  0x48   : > { %s356_s16 = scalar_lea.vmem %s1219_s2, %s1123_s29  ;;  %s359_s19 = scalar_lea.vmem %s1220_s3, %s1123_s29 }
  0x4c   : > { %v975_v2 = vmov 0.0  }
  0x4d   : > { %364 = vst [vmem:[#allocation2] sm:$0x1] %v975_v2  ;;  %365 = vst [vmem:[#allocation3] sm:$0x1] %v975_v2 }
  0x4e   : > { %366 = vst [vmem:[#allocation4] sm:$0x1] %v975_v2  ;;  %367 = vst [vmem:[#allocation5] sm:$0x1] %v975_v2 }
  0x4f PF: > { %v495_v3 = vld [vmem:[%s1221_s4 + $0x8] sm:$0xf]  ;;  %v493_v4 = vld [vmem:[%s1221_s4] sm:$0xf]  ;;  %v976_v5 = vmov 0   ;;  %v385_v17 = vlaneseq  ;;  %vm553_vm0 = vcmask 1043456  }
  0x50   : > { %843 = vset.pattern.permute.xlu1 %v976_v5  ;;  %842 = vset.pattern.permute.xlu0 %v976_v5  ;;  %v496_v6 = vld [vmem:[%s1221_s4 + $0xc] sm:$0xf]  ;;  %v494_v7 = vld [vmem:[%s1221_s4 + $0x4] sm:$0xf]  ;;  %v525_v8 = vsub.f32 1.0, %v493_v4  ;;  %v527_v10 = vsub.f32 1.0, %v495_v3 }
  0x51   : > { %509 = vperm.xlu1 %843, %v495_v3   ;;  %499 = vperm.xlu0 %842, %v493_v4   ;;  %v526_v9 = vsub.f32 1.0, %v494_v7  ;;  %v528_v11 = vsub.f32 1.0, %v496_v6  ;;  %v1147_v12 = vld [vmem:[%s359_s19] sm:$0x1]  ;;  %v977_v15 = vmov 1966171168  }
  0x52   : > { %v383_v16 = vunpack.c.l.s4 %v977_v15  ;;  %v386_v19 = vshrl.u32 %v385_v17, 7  ;;  %v380_v21 = vld [vmem:[%s1112_s14] sm:$0xf]  ;;  %v784_v22 = vld [vmem:[%s1112_s14 + $0x4] sm:$0xf]  ;;  %p785_p6 = scmp.ne.s32.totalorder %s1036_s25, 1 }
  0x54   : > { %v384_v18 = vunpack.c.0.s8 %v383_v16  ;;  %v408_v29 = vsub.s32 0, %v386_v19 }
  0x55   : > { %514 = vperm.xlu1 %843, %v496_v6   ;;  %504 = vperm.xlu0 %842, %v494_v7   ;;  %v583_v13 = vld [vmem:[#allocation5] sm:$0x1] }
  0x56   : > { %v584_v14 = vadd.f32 %v583_v13, %v1147_v12  ;;  %v387_v20 = vsub.s32 %v384_v18, %v386_v19 }
  0x58   : > { %585 = vst [vmem:[#allocation5] sm:$0x1] %v584_v14  ;;  %v388_v23 = vrot.slane %v380_v21, %v387_v20  ;;  %v443_v24 = vrot.slane %v784_v22, %v387_v20 }
  0x59   : > { %536 = vperm.xlu1 %843, %v526_v9   ;;  %531 = vperm.xlu0 %842, %v525_v8   ;;  %v368_v8 = vld [vmem:[%s1115_s7] sm:$0xff] }
  0x5a   : > { %v389_v25 = vcombine.high %v388_v23, %v388_v23  ;;  %v444_v26 = vcombine.high %v443_v24, %v443_v24  ;;  %v396_v27 = vrot.slane %v388_v23, %v387_v20  ;;  %v451_v28 = vrot.slane %v443_v24, %v387_v20 }
  0x5b   : > { %v371_v9 = vmul.f32 %v368_v8, %v368_v8 }
  0x5c   : > { %v403_v30 = vrot.slane %v389_v25, %v387_v20  ;;  %v458_v31 = vrot.slane %v444_v26, %v387_v20  ;;  %v404_v32 = vcombine.high %v396_v27, %v396_v27  ;;  %v459_v33 = vcombine.high %v451_v28, %v451_v28 }
  0x5d   : > { %546 = vperm.xlu1 %843, %v528_v11   ;;  %541 = vperm.xlu0 %842, %v527_v10   ;;  %v409_v34 = vrot.slane %v396_v27, %v408_v29  ;;  %v464_v35 = vrot.slane %v451_v28, %v408_v29  ;;  %v372_v10 = vrot.slane %v371_v9, 4 }
  0x5e   : > { %v405_v36 = vcombine.high %v403_v30, %v403_v30  ;;  %v460_v37 = vcombine.high %v458_v31, %v458_v31  ;;  %v417_v38 = vrot.slane %v404_v32, %v408_v29  ;;  %v472_v39 = vrot.slane %v459_v33, %v408_v29 }
  0x5f   : > { %v426_v40 = vsub.f32 %v409_v34, %v380_v21  ;;  %v481_v41 = vsub.f32 %v464_v35, %v784_v22  ;;  %v413_v44 = vrot.slane %v403_v30, %v408_v29  ;;  %v468_v45 = vrot.slane %v458_v31, %v408_v29 }
  0x60   : > { %v421_v42 = vrot.slane %v405_v36, %v408_v29  ;;  %v476_v43 = vrot.slane %v460_v37, %v408_v29  ;;  %v428_v46 = vsub.f32 %v417_v38, %v380_v21  ;;  %v483_v47 = vsub.f32 %v472_v39, %v784_v22 }
  0x61   : > { %v430_v48 = vmul.f32 %v426_v40, %v426_v40  ;;  %v485_v49 = vmul.f32 %v481_v41, %v481_v41  ;;  %v427_v52 = vsub.f32 %v413_v44, %v380_v21  ;;  %v482_v53 = vsub.f32 %v468_v45, %v784_v22  ;;  %v369_v40 = vld [vmem:[%s356_s16] sm:$0x1] }
  0x62   : > { %v429_v50 = vsub.f32 %v421_v42, %v380_v21  ;;  %v484_v51 = vsub.f32 %v476_v43, %v784_v22  ;;  %v432_v54 = vmul.f32 %v428_v46, %v428_v46  ;;  %v487_v55 = vmul.f32 %v483_v47, %v483_v47 }
  0x63   : > { %v489_v56 = vadd.f32 %v485_v49, %v430_v48  ;;  %v431_v59 = vmul.f32 %v427_v52, %v427_v52  ;;  %v486_v60 = vmul.f32 %v482_v53, %v482_v53  ;;  %v373_v15 = vadd.f32 %v372_v10, %v371_v9  ;;  %v572_v49 = vld [vmem:[#allocation2] sm:$0x1]  ;;  %v579_v52 = vld [vmem:[#allocation4] sm:$0x1] }
  0x64   : > { %v433_v57 = vmul.f32 %v429_v50, %v429_v50  ;;  %v488_v58 = vmul.f32 %v484_v51, %v484_v51  ;;  %v491_v61 = vadd.f32 %v487_v55, %v432_v54  ;;  %v370_v42 = vmul.f32 -0.25, %v369_v40  ;;  %v575_v51 = vld [vmem:[#allocation3] sm:$0x1] }
  0x65   : > { %v490_v2 = vadd.f32 %v486_v60, %v431_v59  ;;  %v374_v23 = vrot.slane %v373_v15, 2 }
  0x66   : > { %v492_v1 = vadd.f32 %v488_v58, %v433_v57 }
  0x67   : > { %v375_v30 = vadd.f32 %v374_v23, %v373_v15 }
  0x69   : > { %v376_v35 = vrot.slane %v375_v30, 1 }
  0x6b   : > { %v377_v38 = vadd.f32 %v376_v35, %v375_v30 }
  0x6d   : > { %v378_v43 = vmul.f32 0.125, %v377_v38 }
  0x6f   : > { %v379_v46 = vsub.f32 %v370_v42, %v378_v43 }
  0xcc   : > { %v510_v62 = vpop.permute.xlu1 %509  ;;  %v500_v63 = vpop.permute.xlu0 %499 }
  0xcd   : > { %v517_v0 = vadd.f32 %v500_v63, %v489_v56  ;;  %v519_v3 = vadd.f32 %v510_v62, %v491_v61 }
  0xcf   : > { %844 = vrsqrt.f32 %v517_v0 }
  0xd0   : > { %v515_v4 = vpop.permute.xlu1 %514  ;;  %v505_v5 = vpop.permute.xlu0 %504  ;;  %846 = vrsqrt.f32 %v519_v3 }
  0xd1   : > { %v520_v6 = vadd.f32 %v515_v4, %v492_v1  ;;  %v518_v7 = vadd.f32 %v505_v5, %v490_v2 }
  0xd3   : > { %848 = vrsqrt.f32 %v520_v6 }
  0xd4   : > { %850 = vrsqrt.f32 %v518_v7  ;;  %v532_v11 = vpop.permute.xlu0 %531  ;;  %v537_v14 = vpop.permute.xlu1 %536 }
  0xd8   : > { %v542_v21 = vpop.permute.xlu0 %541  ;;  %v547_v25 = vpop.permute.xlu1 %546 }
  0xdc   : > { %v845_v13 = vpop.eup %844 }
  0xdd   : > { %v847_v16 = vpop.eup %846  ;;  %v549_v19 = vmul.f32 %v845_v13, %v532_v11 }
  0xde   : > { %v551_v24 = vmul.f32 %v847_v16, %v542_v21 }
  0xdf   : > { %v554_v27 = vsel %vm553_vm0, %v549_v19, 0.0 }
  0xe0   : > { %v849_v18 = vpop.eup %848  ;;  %v557_v31 = vsel %vm553_vm0, %v551_v24, 0.0 }
  0xe1   : > { %v851_v20 = vpop.eup %850  ;;  %v552_v28 = vmul.f32 %v849_v18, %v547_v25 }
  0xe2   : > { %v550_v22 = vmul.f32 %v851_v20, %v537_v14 }
  0xe3   : > { %v559_v33 = vsel %vm553_vm0, %v552_v28, 0.0 }
  0xe4   : > { %v555_v26 = vsel %vm553_vm0, %v550_v22, 0.0 }
  0xe5   : > { %v556_v29 = vadd.f32 %v555_v26, %v554_v27 }
  0xe7   : > { %v558_v32 = vadd.f32 %v557_v31, %v556_v29 }
  0xe9   : > { %v560_v34 = vadd.f32 %v559_v33, %v558_v32 }
  0xeb   : > { %v561_v36 = vsel %vm553_vm0, %v560_v34, 0.0 }
  0xec   : > { %v562_v37 = vrot.slane %v561_v36, 4 }
  0xee   : > { %v563_v39 = vadd.f32 %v562_v37, %v561_v36 }
  0xf0   : > { %v564_v41 = vrot.slane %v563_v39, 2 }
  0xf2   : > { %v565_v44 = vadd.f32 %v564_v41, %v563_v39 }
  0xf4   : > { %v566_v45 = vrot.slane %v565_v44, 1 }
  0xf6   : > { %v567_v47 = vadd.f32 %v566_v45, %v565_v44 }
  0xf8   : > { %v568_v48 = vmul.f32 0.5, %v567_v47 }
  0xfa   : > { %v569_v50 = vadd.f32 %v568_v48, %v379_v46 }
  0xfc   : > { %570 = vst [vmem:[%s351_s18] sm:$0x1] %v569_v50  ;;  %v573_v53 = vadd.f32 %v572_v49, %v569_v50  ;;  %v576_v54 = vmul.f32 %v569_v50, %v569_v50  ;;  %v580_v55 = vmul.f32 %v1147_v12, %v569_v50  ;;  %589 = sbr.rel (%p785_p6) target bundleno = 437 (0x1b5), region = 93 }
  0xfe   : > { %574 = vst [vmem:[#allocation2] sm:$0x1] %v573_v53  ;;  %v577_v56 = vadd.f32 %v576_v54, %v575_v51  ;;  %v581_v57 = vadd.f32 %v580_v55, %v579_v52 }
 0x100   : > { %578 = vst [vmem:[#allocation3] sm:$0x1] %v577_v56  ;;  %582 = vst [vmem:[#allocation4] sm:$0x1] %v581_v57 }
 0x101   : > { %vm591_vm1 = vcmask 1040384   ;;  %v603_v58 = vld [vmem:[#allocation5] sm:$0x1]  ;;  %v625_v13 = vand.u32 127, %v385_v17  ;;  %vm634_vm7 = vcmask 57344  }
 0x102   : > { %v604_v60 = vsel %vm591_vm1, %v603_v58, 0.0 }
 0x103   : > { %605 = vadd.xlane.f32.xlu1 %v604_v60  ;;  %vm626_vm2 = vcmp.eq.s32.totalorder %v625_v13, 0  ;;  %vm628_vm3 = vcmp.eq.s32.totalorder %v625_v13, 1  ;;  %vm631_vm6 = vcmp.eq.s32.totalorder %v625_v13, 2 }
 0x105   : > { %v590_v59 = vld [vmem:[#allocation2] sm:$0x1] }
 0x106   : > { %v592_v61 = vsel %vm591_vm1, %v590_v59, 0.0 }
 0x107   : > { %v599_v62 = vld [vmem:[#allocation4] sm:$0x1]  ;;  %v595_v63 = vld [vmem:[#allocation3] sm:$0x1]  ;;  %593 = vadd.xlane.f32.xlu0 %v592_v61 }
 0x108   : > { %v600_v0 = vsel %vm591_vm1, %v599_v62, 0.0  ;;  %v596_v1 = vsel %vm591_vm1, %v595_v63, 0.0 }
 0x109   : > { %601 = vadd.xlane.f32.xlu1 %v600_v0 }
 0x10b   : > { %597 = vadd.xlane.f32.xlu0 %v596_v1 }
 0x18c   : > { %v606_v9 = vpop.xlane.xlu1 %605 }
 0x190   : > { %v594_v12 = vpop.xlane.xlu0 %593 }
 0x191   : > { %v607_v2 = vmul.f32 0.00390625, %v594_v12 }
 0x192   : > { %v602_v11 = vpop.xlane.xlu1 %601 }
 0x193   : > { %v608_v3 = vmul.f32 256.0, %v607_v2  ;;  %v621_v10 = vmul.f32 %v607_v2, %v606_v9  ;;  %v627_v22 = vsel %vm626_vm2, %v607_v2, 0.0 }
 0x194   : > { %v598_v4 = vpop.xlane.xlu0 %597 }
 0x195   : > { %v609_v5 = vmul.f32 %v608_v3, %v607_v2  ;;  %v622_v14 = vsub.f32 %v602_v11, %v621_v10 }
 0x197   : > { %v610_v6 = vsub.f32 %v598_v4, %v609_v5  ;;  %v623_v19 = vmul.f32 0.00390625, %v622_v14 }
 0x199   : > { %v612_v7 = vmul.f32 0.003921569, %v610_v6  ;;  %v632_v25 = vsel %vm631_vm6, %v623_v19, 0.0 }
 0x19b   : > { %v613_v8 = vmax.f32 %v612_v7, 0.0 }
 0x19d   : > { %852 = vrsqrt.f32 %v613_v8  ;;  %vm616_vm4 = vcmp.eq.f32.partialorder %v613_v8, inf  ;;  %v619_v18 = vand.u32 2147483648, %v613_v8  ;;  %vm618_vm5 = vcmp.eq.f32.partialorder %v613_v8, 0.0 }
 0x1aa   : > { %v853_v15 = vpop.eup %852 }
 0x1ab   : > { %v615_v16 = vmul.f32 %v853_v15, %v613_v8 }
 0x1ad   : > { %v617_v20 = vsel %vm616_vm4, %v613_v8, %v615_v16 }
 0x1ae   : > { %v620_v21 = vsel %vm618_vm5, %v619_v18, %v617_v20 }
 0x1af   : > { %v629_v23 = vsel %vm628_vm3, %v620_v21, 0.0 }
 0x1b0   : > { %v630_v24 = vadd.f32 %v629_v23, %v627_v22 }
 0x1b2   : > { %v633_v26 = vadd.f32 %v632_v25, %v630_v24 }
 0x1b4   : > { %635 = vst.msk [vmem:[#allocation11] sm:$0x1] %vm634_vm7, %v633_v26 }
 0x1b5 PF: > { %s786_s29 = sshll.u32 %s1036_s25, 4  ;;  %s649_s8 = sshll.u32 %s351_s18, 4  ;;  %s650_s8 = int_to_ptr.vmem [resolvable:$true] %s649_s8 }
 0x1b6   : > { %s647_s19 = scalar_lea.hbm %s1222_s5, %s786_s29  ;;  %s637_s20 = scalar_lea.sflag [#allocation9], %s1109_s0 }
 0x1b7   : > { %s880_s28 = scalar_lea.vmem %s650_s8, 16  ;;  %p1233_p10 = scmp.ne.s32.totalorder %s1230_s9, 0 }
 0x1b8   : > { %p881_p9 = scmp.ne.s32.totalorder %s650_s8, %s880_s28  ;;  %s978_s11 = smov [#allocation10]  }
 0x1b9   : > { %s884_s15 = sshll.u32 %s978_s11, 4  ;;  %s885_s15 = int_to_ptr.vmem [resolvable:$false] %s884_s15 }
 0x1ba   : > { %p882_p11 = pnand %p881_p9, %p1233_p10  ;;  %s886_s12 = scalar_lea.vmem %s885_s15, 32 }
 0x1bb   : > { %p887_p4 = scmp.lt.s32.totalorder %s650_s8, %s885_s15  ;;  %p888_p8 = scmp.lt.s32.totalorder %s886_s12, %s880_s28 }
 0x1bc   : > { %p883_p3 = pneg %p882_p11 }
 0x1bd   : > { %p889_p12 = por %p888_p8, %p887_p4 }
 0x1bf   : > { %p890_p13 = pnand %p889_p12, %p883_p3 }
 0x1c1   : > { %893 = shalt.err (!%p890_p13)
}
 0x1c2   : > { %s894_s13 = scalar_lea.hbm %s647_s19, 16  ;;  %s898_s17 = scalar_lea.hbm %s1222_s5, 32 }
 0x1c3   : > { %p895_p0 = scmp.ne.s32.totalorder %s647_s19, %s894_s13  ;;  %p899_p5 = scmp.lt.s32.totalorder %s647_s19, %s1222_s5 }
 0x1c4   : > { %p900_p7 = scmp.lt.s32.totalorder %s898_s17, %s894_s13 }
 0x1c5   : > { %p896_p1 = pnand %p895_p0, %p1233_p10 }
 0x1c6   : > { %p901_p6 = por %p900_p7, %p899_p5 }
 0x1c7   : > { %p897_p2 = pneg %p896_p1 }
 0x1c9   : > { %p902_p9 = pnand %p901_p6, %p897_p2 }
 0x1cb   : > { %905 = shalt.err (!%p902_p9)
}
 0x1cc   : > { %793 = dma.vmem_to_hbm [thread:$0]  (%p1233_p10), %s650_s8, 16, %s647_s19, %s637_s20  }
 0x1cd   : > { %s979_s29 = smov [#allocation11]   ;;  %p1234_p3 = scmp.eq.s32.totalorder %s1036_s25, 1 }
 0x1ce   : > { %s660_s16 = sshll.u32 %s979_s29, 4  ;;  %s661_s16 = int_to_ptr.vmem [resolvable:$true] %s660_s16 }
 0x1cf   : > { %s906_s26 = scalar_lea.vmem %s661_s16, 16  ;;  %s912_s28 = scalar_lea.vmem %s661_s16, 32 }
 0x1d0   : > { %p907_p11 = scmp.ne.s32.totalorder %s661_s16, %s906_s26  ;;  %p913_p12 = scmp.lt.s32.totalorder %s661_s16, %s661_s16 }
 0x1d1   : > { %p914_p13 = scmp.lt.s32.totalorder %s912_s28, %s906_s26 }
 0x1d2   : > { %p908_p4 = pnand %p907_p11, %p1234_p3 }
 0x1d3   : > { %p915_p0 = por %p914_p13, %p913_p12 }
 0x1d4   : > { %p909_p8 = pneg %p908_p4 }
 0x1d6   : > { %p916_p1 = pnand %p915_p0, %p909_p8 }
 0x1d8   : > { %919 = shalt.err (!%p916_p1)
}
 0x1d9   : > { %p1235_p2 = pmov %p1234_p3 }
 0x1db   : > { %795 = dma.vmem_to_hbm [thread:$0]  (%p1235_p2), %s661_s16, 16, %s1223_s6, [#allocation12]  }
 0x1dc   : > { %p1236_p10 = pmov %p1235_p2 }
 0x1dd   : > { %p1237_p5 = pmov %p1235_p2 }
 0x1de   : > { %951 = dma.done.wait (%p1236_p10), [#allocation12], 16  }
 0x1df   : > { %953 = vsyncadd (%p1237_p5), [#allocation12], 4294967280 }
 0x1e0 PF: > { %s676_s19 = sand.u32 1, %s960_s21   ;;  %p1238_p7 = scmp.ne.s32.totalorder %s1231_s10, 0 }
 0x1e1   : > { %p1239_p6 = scmp.ge.s32.totalorder %s972_s24, 2  ;;  %s677_s8 = scalar_lea.sflag [#allocation9], %s676_s19 }
 0x1e3   : > { %p800_p9 = pnand %p1239_p6, %p1238_p7 }
 0x1e5   : > { %p801_p11 = pneg %p800_p9 }
 0x1e7   : > { %955 = dma.done.wait (%p801_p11), %s677_s8, 16  }
 0x1e8   : > { %957 = vsyncadd (%p801_p11), %s677_s8, 4294967280  ;;  %p21_p3 = scmp.ge.s32.totalorder %s1040_s27, 4   ;;  %s1240_s21 = smov %s964_s22 }
 0x1e9   : > { %s1241_s22 = smov %s968_s23  ;;  %s1242_s23 = smov %s1052_s30 }
 0x1ea   : > { %s1243_s24 = smov %s1040_s27  ;;  %23 = sbr.rel (!%p21_p3) target bundleno = 8 (0x8), region = 157 }
 0x1ef   :  { %681 = vsyncpa [#allocation8], 1 }
 0x1f0   :  { %683 = vsyncpa [#allocation8 + $0x1], 1 }
 0x1f1   :  { %684 = vsyncpa [#allocation9], 1 }
 0x1f2   :  { %686 = vsyncpa [#allocation9 + $0x1], 1 }
 0x1f3   :  { %687 = vsyncpa [#allocation12], 1 }

</bundles_post_ra>
